<compile_context>
chip_gen: v7x
topology: tpu7x:2x2x1
jax: 0.10.0
libtpu: 0.0.40
codegen_flags: <defaults>
</compile_context>

<pallas_src>
import math
from functools import partial

import jax
import jax.numpy as jnp
from jax import lax
from jax.experimental import pallas as pl
from jax.experimental.pallas import tpu as pltpu


# dot_general dimension numbers for 2-D operands (no batch dims).
_NN = (((1,), (0,)), ((), ()))   # (m,k) @ (k,n)
_NT = (((1,), (1,)), ((), ()))   # (m,k) @ (n,k)^T
_TN = (((0,), (0,)), ((), ()))   # (k,m)^T @ (k,n)


def _layer_norm(x, w, b, eps=1e-6):
    mu = jnp.mean(x, axis=-1, keepdims=True)
    var = jnp.mean((x - mu) ** 2, axis=-1, keepdims=True)
    return (x - mu) * lax.rsqrt(var + eps) * w + b


def _gelu_exact(x):
    # PyTorch nn.GELU() default: exact erf-based GELU.
    return 0.5 * x * (1.0 + lax.erf(x * (1.0 / math.sqrt(2.0))))


def encoder_block_kernel(
    x_ref,            # (1, S, D)   f32   input slab for this batch element
    ln1_w, ln1_b,     # (1, D)      f32
    wqkv,             # (3D, D)     bf16  PyTorch [out,in]; q rows pre-scaled
    bq,               # (H, 1, dh)  f32   q bias, pre-scaled by 1/sqrt(dh)
    wo_t,             # (D, D)      bf16  pre-transposed to [in, out]
    bo,               # (1, D)      f32   out-proj bias (+ folded v bias)
    ln2_w, ln2_b,     # (1, D)      f32
    w1_blk,           # (D, TM)     bf16  [in, out] block of MLP linear 1
    b1_blk,           # (1, TM)     f32   block of MLP bias 1
    w2_blk,           # (TM, D)     bf16  [in, out] block of MLP linear 2
    b2,               # (1, D)      f32
    out_ref,          # (1, S, D)   f32
    qkvT_scr,         # (3D, S)     f32   staged qkv^T (bounds head-loop live ranges)
    oT_scr,           # (D, S)      bf16  stacked (transposed) head outputs
    x2_scr,           # (S, D)      f32   attention residual, persists over m
    yn_scr,           # (S, D)      bf16  LayerNorm2 output, persists over m
    yacc_scr,         # (S, D)      f32   MLP output accumulator
    *, num_heads: int,
):
    f32, bf16 = jnp.float32, jnp.bfloat16
    m = pl.program_id(1)
    nm = pl.num_programs(1)

    S, D = x_ref.shape[1], x_ref.shape[2]
    H = num_heads
    dh = D // H

    # ------------- attention half: runs once per batch row (m == 0) --------
    @pl.when(m == 0)
    def _attention():
        x_in = x_ref[0]                                        # (S, D) f32
        xn = _layer_norm(x_in, ln1_w[0], ln1_b[0])

        # qkv^T = Wqkv @ xn^T  -- xn fed transposed via contraction dims
        # (no explicit .T / relayout), PyTorch-layout weight used as-is.
        qkvT_scr[...] = lax.dot_general(
            wqkv[...], xn.astype(bf16), _NT, preferred_element_type=f32)

        def head_body(h, carry):
            oq = pl.multiple_of(h * dh, dh)
            ok = pl.multiple_of(D + h * dh, dh)
            ov = pl.multiple_of(2 * D + h * dh, dh)
            qT = qkvT_scr[pl.ds(oq, dh), :]                    # (dh, S) f32 (scaled)
            kT = qkvT_scr[pl.ds(ok, dh), :]                    # (dh, S) f32 (no bias)
            vT = qkvT_scr[pl.ds(ov, dh), :]                    # (dh, S) f32 (no bias)

            # scores: q @ k^T, both operands transposed -> contract dim 0.
            s = lax.dot_general(qT.astype(bf16), kT.astype(bf16), _TN,
                                preferred_element_type=f32)    # (S, S)
            # query-bias correction (k bias drops under the softmax row
            # shift; v bias is folded into the output-projection bias).
            s = s + lax.dot_general(bq[h], kT, _NN,
                                    preferred_element_type=f32)  # (1, S)
            s = s - jnp.max(s, axis=-1, keepdims=True)
            p = jnp.exp(s)
            p = p * pl.reciprocal(jnp.sum(p, axis=-1, keepdims=True), approx=True)

            # head output, transposed: o^T = v^T @ p^T (full-lane sublane store).
            ohT = lax.dot_general(vT.astype(bf16), p.astype(bf16), _NT,
                                  preferred_element_type=f32)  # (dh, S)
            oT_scr[pl.ds(oq, dh), :] = ohT.astype(bf16)
            return carry

        lax.fori_loop(0, H, head_body, 0)

        # Single dense K=D output projection on the stacked head outputs.
        attn = lax.dot_general(oT_scr[...], wo_t[...], _TN,
                               preferred_element_type=f32) + bo[0]   # (S, D)

        # attention dropout / dropout -> identity (eval mode), then residual.
        x2 = attn + x_in
        x2_scr[...] = x2
        yn_scr[...] = _layer_norm(x2, ln2_w[0], ln2_b[0]).astype(bf16)
        yacc_scr[...] = jnp.zeros_like(yacc_scr)

    # ------------- MLP half: one TM-wide tile of the hidden dim per step ---
    h1 = jnp.dot(yn_scr[...], w1_blk[...], preferred_element_type=f32) + b1_blk[0]
    h1 = _gelu_exact(h1)                                       # (S, TM) f32
    yacc_scr[...] += jnp.dot(h1.astype(bf16), w2_blk[...],
                             preferred_element_type=f32)

    @pl.when(m == nm - 1)
    def _finalize():
        out_ref[0] = (x2_scr[...] + yacc_scr[...] + b2[0]).astype(out_ref.dtype)


def prepare_params(params, num_heads):
    """ONE-TIME weight prep (call at parameter-load time, not per forward).

    - bf16 casts and [in,out] pre-transposes for wo / w1 / w2,
    - 1/sqrt(dh) folded into the q rows of the packed QKV weight and bias,
    - v bias folded through the output projection into its bias,
    - biases / LN params laid out lane-major (1, D)-shaped.
    """
    f32, bf16 = jnp.float32, jnp.bfloat16
    D = params["ln1_w"].shape[0]
    M = params["mlp_b1"].shape[0]
    H = num_heads
    dh = D // H
    scale = 1.0 / math.sqrt(dh)

    w_in = params["in_proj_w"].astype(f32)                # (3D, D) [out, in]
    b_in = params["in_proj_b"].astype(f32)                # (3D,)
    w_out = params["out_proj_w"].astype(f32)              # (D, D)  [out, in]

    wqkv = jnp.concatenate([w_in[:D] * scale, w_in[D:]], axis=0).astype(bf16)
    bq = (b_in[:D] * scale).reshape(H, 1, dh).astype(f32)
    bo_eff = (params["out_proj_b"].astype(f32) + b_in[2 * D:] @ w_out.T).reshape(1, D)

    return {
        "ln1_w": params["ln1_w"].reshape(1, D).astype(f32),
        "ln1_b": params["ln1_b"].reshape(1, D).astype(f32),
        "wqkv": wqkv,                                      # (3D, D) bf16
        "bq": bq,                                          # (H, 1, dh) f32
        "wo_t": w_out.T.astype(bf16),                      # (D, D)  [in, out]
        "bo": bo_eff.astype(f32),                          # (1, D)
        "ln2_w": params["ln2_w"].reshape(1, D).astype(f32),
        "ln2_b": params["ln2_b"].reshape(1, D).astype(f32),
        "w1_t": params["mlp_w1"].astype(f32).T.astype(bf16),   # (D, M) [in, out]
        "b1": params["mlp_b1"].reshape(1, M).astype(f32),
        "w2_t": params["mlp_w2"].astype(f32).T.astype(bf16),   # (M, D) [in, out]
        "b2": params["mlp_b2"].reshape(1, D).astype(f32),
    }


def _single_buffered_spec(shape, index_map):
    """Whole-array, grid-invariant operand: a second pipeline buffer is waste."""
    if hasattr(pl, "Buffered"):
        try:
            return pl.BlockSpec(shape, index_map, pipeline_mode=pl.Buffered(1))
        except TypeError:
            pass
    return pl.BlockSpec(shape, index_map)


def _vmem_limit_bytes(S, D, M, TM):
    def tile(r, c, itemsize):
        return (-(-r // 8) * 8) * (-(-c // 128) * 128) * itemsize

    weights = (tile(3 * D, D, 2) + tile(D, D, 2)                    # wqkv, wo (x1)
               + 2 * (tile(D, TM, 2) + tile(TM, D, 2) + tile(1, TM, 4)))  # M-blocked (x2)
    small = 8 * tile(1, D, 4) + (1 << 20)                           # ln/bias vectors, bq
    blocks = 2 * 2 * tile(S, D, 4)                                  # x + out blocks (x2)
    scratch = (tile(3 * D, S, 4) + tile(D, S, 2)
               + 2 * tile(S, D, 4) + tile(S, D, 2))
    live = (3 * tile(S, S, 4) + 2 * tile(S, TM, 4)                  # scores / MLP hidden
            + 4 * tile(S, D, 4) + tile(3 * D, S, 4))                # attn/x2/yn, qkv^T value
    need = weights + small + blocks + scratch + live
    try:
        cap = int(pltpu.get_tpu_info().vmem_capacity_bytes)
    except Exception:
        cap = 64 << 20                                              # conservative (v7x)
    return int(min(max(int(need * 1.25) + (4 << 20), 32 << 20), int(cap * 0.85)))


def encoder_block(x, prep, num_heads, mlp_tile=512):
    """x: (B, S, D) float32. prep: dict from prepare_params()."""
    B, S, D = x.shape
    M = prep["b1"].shape[1]

    TM = M if (M <= mlp_tile or M % mlp_tile != 0) else mlp_tile
    n_m = M // TM

    def inv(arr):
        nd = arr.ndim
        return _single_buffered_spec(arr.shape, lambda b, m, _nd=nd: (0,) * _nd)

    args = (
        x,
        prep["ln1_w"], prep["ln1_b"],
        prep["wqkv"], prep["bq"],
        prep["wo_t"], prep["bo"],
        prep["ln2_w"], prep["ln2_b"],
        prep["w1_t"], prep["b1"], prep["w2_t"],
        prep["b2"],
    )

    in_specs = [
        pl.BlockSpec((1, S, D), lambda b, m: (b, 0, 0)),
        inv(prep["ln1_w"]), inv(prep["ln1_b"]),
        inv(prep["wqkv"]), inv(prep["bq"]),
        inv(prep["wo_t"]), inv(prep["bo"]),
        inv(prep["ln2_w"]), inv(prep["ln2_b"]),
        pl.BlockSpec((D, TM), lambda b, m: (0, m)),
        pl.BlockSpec((1, TM), lambda b, m: (0, m)),
        pl.BlockSpec((TM, D), lambda b, m: (m, 0)),
        inv(prep["b2"]),
    ]

    scratch_shapes = [
        pltpu.VMEM((3 * D, S), jnp.float32),   # staged qkv^T
        pltpu.VMEM((D, S), jnp.bfloat16),      # stacked head outputs (transposed)
        pltpu.VMEM((S, D), jnp.float32),       # attention residual x2
        pltpu.VMEM((S, D), jnp.bfloat16),      # LayerNorm2 output
        pltpu.VMEM((S, D), jnp.float32),       # MLP output accumulator
    ]

    return pl.pallas_call(
        partial(encoder_block_kernel, num_heads=num_heads),
        out_shape=jax.ShapeDtypeStruct((B, S, D), x.dtype),
        grid_spec=pltpu.PrefetchScalarGridSpec(
            num_scalar_prefetch=0,
            grid=(B, n_m),
            in_specs=in_specs,
            out_specs=pl.BlockSpec((1, S, D), lambda b, m: (b, 0, 0)),
            scratch_shapes=scratch_shapes,
        ),
        compiler_params=pltpu.CompilerParams(
            dimension_semantics=("parallel", "arbitrary"),
            vmem_limit_bytes=_vmem_limit_bytes(S, D, M, TM),
        ),
    )(*args)


def init_params(key, hidden_dim, mlp_dim):
    """Synthetic init matching EncoderBlock.__init__ shapes/layouts.

    Large matmul weights are stored bf16 (the kernel's MXU input dtype).
    PyTorch inits attention biases to 0 and LN affine to identity; here they
    get small nonzero values so the reference comparison exercises every
    bias / affine code path of the kernel.
    """
    D, M = hidden_dim, mlp_dim
    ks = jax.random.split(key, 8)
    f32, bf16 = jnp.float32, jnp.bfloat16
    bound = math.sqrt(3.0 / D)
    xav = math.sqrt(6.0 / (D + M))
    u = lambda k, shape, b: jax.random.uniform(k, shape, f32, -b, b)
    return {
        "ln1_w": 1.0 + 0.05 * jax.random.normal(ks[4], (D,), f32),
        "ln1_b": 0.05 * jax.random.normal(ks[5], (D,), f32),
        "in_proj_w": u(ks[0], (3 * D, D), bound).astype(bf16),
        "in_proj_b": u(ks[6], (3 * D,), 0.1),
        "out_proj_w": u(ks[1], (D, D), bound).astype(bf16),
        "out_proj_b": u(ks[7], (D,), 0.1),
        "ln2_w": jnp.ones((D,), f32),
        "ln2_b": jnp.zeros((D,), f32),
        # MLPBlock: Linear(D, M) xavier-uniform, bias ~ N(0, 1e-6) -> tiny det.
        "mlp_w1": u(ks[2], (M, D), xav).astype(bf16),
        "mlp_b1": 1e-6 * jnp.ones((M,), f32),
        "mlp_w2": u(ks[3], (D, M), xav).astype(bf16),
        "mlp_b2": 1e-6 * jnp.ones((D,), f32),
    }


def encoder_block_ref(x, p, num_heads):
    """Pure-JAX float32 reference (same bf16-stored weights, upcast to f32)."""
    B, S, D = x.shape
    dh = D // num_heads
    up = lambda a: a.astype(jnp.float32)

    def ln(v, w, b):
        mu = v.mean(-1, keepdims=True)
        var = ((v - mu) ** 2).mean(-1, keepdims=True)
        return (v - mu) / jnp.sqrt(var + 1e-6) * w + b

    xn = ln(x, p["ln1_w"], p["ln1_b"])
    qkv = xn @ up(p["in_proj_w"]).T + p["in_proj_b"]
    q, k, v = qkv[..., :D], qkv[..., D:2 * D], qkv[..., 2 * D:]
    q = q.reshape(B, S, num_heads, dh).transpose(0, 2, 1, 3)
    k = k.reshape(B, S, num_heads, dh).transpose(0, 2, 1, 3)
    v = v.reshape(B, S, num_heads, dh).transpose(0, 2, 1, 3)
    s = jnp.einsum("bhqd,bhkd->bhqk", q, k) / math.sqrt(dh)
    a = jax.nn.softmax(s, axis=-1)
    o = jnp.einsum("bhqk,bhkd->bhqd", a, v).transpose(0, 2, 1, 3).reshape(B, S, D)
    attn = o @ up(p["out_proj_w"]).T + p["out_proj_b"]
    x2 = attn + x
    yn = ln(x2, p["ln2_w"], p["ln2_b"])
    h1 = jax.nn.gelu(yn @ up(p["mlp_w1"]).T + p["mlp_b1"], approximate=False)
    y = h1 @ up(p["mlp_w2"]).T + p["mlp_b2"]
    return x2 + y


if __name__ == "__main__":
    B, S, D, H, M = 2, 16, 64, 4, 128

    key = jax.random.PRNGKey(0)
    kx, kp = jax.random.split(key)
    x = jax.random.normal(kx, (B, S, D), jnp.float32)
    params = init_params(kp, D, M)

    prep = prepare_params(params, H)        # one-time weight prep (not per call)
    out = jax.block_until_ready(encoder_block(x, prep, num_heads=H))
    ref = encoder_block_ref(x, params, H)

    assert out.shape == (B, S, D) and out.dtype == x.dtype
    # Kernel runs its matmuls with bf16 inputs (f32 accumulation) and an
    # approximate softmax reciprocal; the reference runs the same bf16-stored
    # weights entirely in f32, so allow bf16-level error.
    err = jnp.abs(out - ref)
    assert jnp.max(err) < 8e-2, "max-abs mismatch vs pure-JAX reference"
    assert jnp.mean(err) < 2e-2, "mean-abs mismatch vs pure-JAX reference"

    print("KERNEL_OK")
</pallas_src>

<mosaic_0001>
module attributes {stable_mosaic.version = 11 : i64} {
  func.func @encoder_block_kernel(%arg0: i32, %arg1: i32, %arg2: memref<1x16x64xf32, #tpu.memory_space<vmem>>, %arg3: memref<1x64xf32, #tpu.memory_space<vmem>>, %arg4: memref<1x64xf32, #tpu.memory_space<vmem>>, %arg5: memref<192x64xbf16, #tpu.memory_space<vmem>>, %arg6: memref<4x1x16xf32, #tpu.memory_space<vmem>>, %arg7: memref<64x64xbf16, #tpu.memory_space<vmem>>, %arg8: memref<1x64xf32, #tpu.memory_space<vmem>>, %arg9: memref<1x64xf32, #tpu.memory_space<vmem>>, %arg10: memref<1x64xf32, #tpu.memory_space<vmem>>, %arg11: memref<64x128xbf16, #tpu.memory_space<vmem>>, %arg12: memref<1x128xf32, #tpu.memory_space<vmem>>, %arg13: memref<128x64xbf16, #tpu.memory_space<vmem>>, %arg14: memref<1x64xf32, #tpu.memory_space<vmem>>, %arg15: memref<1x16x64xf32, #tpu.memory_space<vmem>>, %arg16: memref<192x16xf32, #tpu.memory_space<vmem>>, %arg17: memref<64x16xbf16, #tpu.memory_space<vmem>>, %arg18: memref<16x64xf32, #tpu.memory_space<vmem>>, %arg19: memref<16x64xbf16, #tpu.memory_space<vmem>>, %arg20: memref<16x64xf32, #tpu.memory_space<vmem>>) attributes {dimension_semantics = [#tpu.dimension_semantics<parallel>, #tpu.dimension_semantics<arbitrary>], iteration_bounds = array<i64: 2, 1>, scalar_prefetch = 0 : i64, scratch_operands = 5 : i64, tpu.core_type = #tpu.core_type<tc>, window_params = [{transform_indices = @transform_0, window_bounds = array<i64: 1, 16, 64>}, {pipeline_mode = #tpu.pipeline_mode<synchronous>, transform_indices = @transform_1, window_bounds = array<i64: 1, 64>}, {pipeline_mode = #tpu.pipeline_mode<synchronous>, transform_indices = @transform_2, window_bounds = array<i64: 1, 64>}, {pipeline_mode = #tpu.pipeline_mode<synchronous>, transform_indices = @transform_3, window_bounds = array<i64: 192, 64>}, {pipeline_mode = #tpu.pipeline_mode<synchronous>, transform_indices = @transform_4, window_bounds = array<i64: 4, 1, 16>}, {pipeline_mode = #tpu.pipeline_mode<synchronous>, transform_indices = @transform_5, window_bounds = array<i64: 64, 64>}, {pipeline_mode = #tpu.pipeline_mode<synchronous>, transform_indices = @transform_6, window_bounds = array<i64: 1, 64>}, {pipeline_mode = #tpu.pipeline_mode<synchronous>, transform_indices = @transform_7, window_bounds = array<i64: 1, 64>}, {pipeline_mode = #tpu.pipeline_mode<synchronous>, transform_indices = @transform_8, window_bounds = array<i64: 1, 64>}, {transform_indices = @transform_9, window_bounds = array<i64: 64, 128>}, {transform_indices = @transform_10, window_bounds = array<i64: 1, 128>}, {transform_indices = @transform_11, window_bounds = array<i64: 128, 64>}, {pipeline_mode = #tpu.pipeline_mode<synchronous>, transform_indices = @transform_12, window_bounds = array<i64: 1, 64>}, {transform_indices = @transform_13, window_bounds = array<i64: 1, 16, 64>}]} {
    %c0_i32 = arith.constant 0 : i32
    %0 = arith.cmpi eq, %arg1, %c0_i32 : i32
    %1 = arith.extui %0 : i1 to i32
    %c0_i32_0 = arith.constant 0 : i32
    %2 = arith.cmpi ne, %1, %c0_i32_0 : i32
    scf.if %2 {
      %c0_18 = arith.constant 0 : index
      %c0_19 = arith.constant 0 : index
      %c0_20 = arith.constant 0 : index
      %28 = vector.load %arg2[%c0_18, %c0_19, %c0_20] : memref<1x16x64xf32, #tpu.memory_space<vmem>>, vector<1x16x64xf32>
      %29 = vector.shape_cast %28 : vector<1x16x64xf32> to vector<16x64xf32>
      %c0_21 = arith.constant 0 : index
      %c0_22 = arith.constant 0 : index
      %30 = vector.load %arg3[%c0_21, %c0_22] : memref<1x64xf32, #tpu.memory_space<vmem>>, vector<1x64xf32>
      %31 = vector.shape_cast %30 : vector<1x64xf32> to vector<64xf32>
      %c0_23 = arith.constant 0 : index
      %c0_24 = arith.constant 0 : index
      %32 = vector.load %arg4[%c0_23, %c0_24] : memref<1x64xf32, #tpu.memory_space<vmem>>, vector<1x64xf32>
      %33 = vector.shape_cast %32 : vector<1x64xf32> to vector<64xf32>
      %cst_25 = arith.constant dense<0.000000e+00> : vector<16xf32>
      %34 = vector.multi_reduction <add>, %29, %cst_25 [1] : vector<16x64xf32> to vector<16xf32>
      %35 = vector.shape_cast %34 : vector<16xf32> to vector<16x1xf32>
      %cst_26 = arith.constant 6.400000e+01 : f32
      %36 = vector.broadcast %cst_26 : f32 to vector<16x1xf32>
      %37 = arith.divf %35, %36 : vector<16x1xf32>
      %38 = vector.broadcast %37 : vector<16x1xf32> to vector<16x64xf32>
      %39 = arith.subf %29, %38 : vector<16x64xf32>
      %40 = arith.mulf %39, %39 : vector<16x64xf32>
      %cst_27 = arith.constant dense<0.000000e+00> : vector<16xf32>
      %41 = vector.multi_reduction <add>, %40, %cst_27 [1] : vector<16x64xf32> to vector<16xf32>
      %42 = vector.shape_cast %41 : vector<16xf32> to vector<16x1xf32>
      %cst_28 = arith.constant 6.400000e+01 : f32
      %43 = vector.broadcast %cst_28 : f32 to vector<16x1xf32>
      %44 = arith.divf %42, %43 : vector<16x1xf32>
      %45 = vector.broadcast %37 : vector<16x1xf32> to vector<16x64xf32>
      %46 = arith.subf %29, %45 : vector<16x64xf32>
      %cst_29 = arith.constant 9.99999997E-7 : f32
      %47 = vector.broadcast %cst_29 : f32 to vector<16x1xf32>
      %48 = arith.addf %44, %47 : vector<16x1xf32>
      %49 = math.rsqrt %48 : vector<16x1xf32>
      %50 = vector.broadcast %49 : vector<16x1xf32> to vector<16x64xf32>
      %51 = arith.mulf %46, %50 : vector<16x64xf32>
      %52 = vector.shape_cast %31 : vector<64xf32> to vector<1x64xf32>
      %53 = vector.broadcast %52 : vector<1x64xf32> to vector<16x64xf32>
      %54 = arith.mulf %51, %53 : vector<16x64xf32>
      %55 = vector.shape_cast %33 : vector<64xf32> to vector<1x64xf32>
      %56 = vector.broadcast %55 : vector<1x64xf32> to vector<16x64xf32>
      %57 = arith.addf %54, %56 : vector<16x64xf32>
      %c0_30 = arith.constant 0 : index
      %c0_31 = arith.constant 0 : index
      %58 = vector.load %arg5[%c0_30, %c0_31] : memref<192x64xbf16, #tpu.memory_space<vmem>>, vector<192x64xbf16>
      %59 = arith.truncf %57 : vector<16x64xf32> to vector<16x64xbf16>
      %cst_32 = arith.constant dense<0.000000e+00> : vector<192x16xf32>
      %60 = tpu.matmul %58, %59, %cst_32 {dimension_numbers = #tpu.dot_dimension_numbers<[1], [1], [0], [0], [0, 0, 1, 0], [], []>} : vector<192x64xbf16>, vector<16x64xbf16>, vector<192x16xf32> -> vector<192x16xf32>
      %c0_33 = arith.constant 0 : index
      %c0_34 = arith.constant 0 : index
      %61 = vector.load %arg16[%c0_33, %c0_34] : memref<192x16xf32, #tpu.memory_space<vmem>>, vector<192x16xf32>
      tpu.vector_store %arg16[%c0_33, %c0_34], %60 {strides = array<i32>} : memref<192x16xf32, #tpu.memory_space<vmem>>, vector<192x16xf32>,
      %c0_i32_35 = arith.constant 0 : i32
      %c4_i32 = arith.constant 4 : i32
      %62 = arith.addi %c0_i32_35, %c4_i32 : i32
      %c1_i32 = arith.constant 1 : i32
      scf.for %arg21 = %c0_i32_35 to %62 step %c1_i32  : i32 {
        %c16_i32 = arith.constant 16 : i32
        %105 = arith.muli %arg21, %c16_i32 : i32
        %106 = tpu.assume_multiple %105, 16 : i32
        %c16_i32_60 = arith.constant 16 : i32
        %107 = arith.muli %arg21, %c16_i32_60 : i32
        %c64_i32 = arith.constant 64 : i32
        %108 = arith.addi %c64_i32, %107 : i32
        %109 = tpu.assume_multiple %108, 16 : i32
        %c16_i32_61 = arith.constant 16 : i32
        %110 = arith.muli %arg21, %c16_i32_61 : i32
        %c128_i32 = arith.constant 128 : i32
        %111 = arith.addi %c128_i32, %110 : i32
        %112 = tpu.assume_multiple %111, 16 : i32
        %113 = arith.index_cast %106 : i32 to index
        %c0_62 = arith.constant 0 : index
        %114 = vector.load %arg16[%113, %c0_62] : memref<192x16xf32, #tpu.memory_space<vmem>>, vector<16x16xf32>
        %115 = arith.index_cast %109 : i32 to index
        %c0_63 = arith.constant 0 : index
        %116 = vector.load %arg16[%115, %c0_63] : memref<192x16xf32, #tpu.memory_space<vmem>>, vector<16x16xf32>
        %117 = arith.index_cast %112 : i32 to index
        %c0_64 = arith.constant 0 : index
        %118 = vector.load %arg16[%117, %c0_64] : memref<192x16xf32, #tpu.memory_space<vmem>>, vector<16x16xf32>
        %119 = arith.truncf %114 : vector<16x16xf32> to vector<16x16xbf16>
        %120 = arith.truncf %116 : vector<16x16xf32> to vector<16x16xbf16>
        %cst_65 = arith.constant dense<0.000000e+00> : vector<16x16xf32>
        %121 = tpu.matmul %119, %120, %cst_65 {dimension_numbers = #tpu.dot_dimension_numbers<[0], [0], [1], [1], [0, 1, 1, 1], [], []>} : vector<16x16xbf16>, vector<16x16xbf16>, vector<16x16xf32> -> vector<16x16xf32>
        %122 = arith.index_cast %arg21 : i32 to index
        %c0_66 = arith.constant 0 : index
        %c0_67 = arith.constant 0 : index
        %123 = vector.load %arg6[%122, %c0_66, %c0_67] : memref<4x1x16xf32, #tpu.memory_space<vmem>>, vector<1x1x16xf32>
        %124 = vector.shape_cast %123 : vector<1x1x16xf32> to vector<1x16xf32>
        %cst_68 = arith.constant dense<0.000000e+00> : vector<1x16xf32>
        %125 = tpu.matmul %124, %116, %cst_68 {dimension_numbers = #tpu.dot_dimension_numbers<[1], [0], [0], [1], [0, 0, 1, 1], [], []>} : vector<1x16xf32>, vector<16x16xf32>, vector<1x16xf32> -> vector<1x16xf32>
        %126 = vector.broadcast %125 : vector<1x16xf32> to vector<16x16xf32>
        %127 = arith.addf %121, %126 : vector<16x16xf32>
        %cst_69 = arith.constant dense<0xFF800000> : vector<16xf32>
        %128 = vector.multi_reduction <maximumf>, %127, %cst_69 [1] : vector<16x16xf32> to vector<16xf32>
        %129 = vector.shape_cast %128 : vector<16xf32> to vector<16x1xf32>
        %130 = vector.broadcast %129 : vector<16x1xf32> to vector<16x16xf32>
        %131 = arith.subf %127, %130 : vector<16x16xf32>
        %132 = math.exp %131 : vector<16x16xf32>
        %cst_70 = arith.constant dense<0.000000e+00> : vector<16xf32>
        %133 = vector.multi_reduction <add>, %132, %cst_70 [1] : vector<16x16xf32> to vector<16xf32>
        %134 = vector.shape_cast %133 : vector<16xf32> to vector<16x1xf32>
        %135 = tpu.reciprocal %134 {approx = true} : vector<16x1xf32> -> vector<16x1xf32>
        %136 = vector.broadcast %135 : vector<16x1xf32> to vector<16x16xf32>
        %137 = arith.mulf %132, %136 : vector<16x16xf32>
        %138 = arith.truncf %118 : vector<16x16xf32> to vector<16x16xbf16>
        %139 = arith.truncf %137 : vector<16x16xf32> to vector<16x16xbf16>
        %cst_71 = arith.constant dense<0.000000e+00> : vector<16x16xf32>
        %140 = tpu.matmul %138, %139, %cst_71 {dimension_numbers = #tpu.dot_dimension_numbers<[1], [1], [0], [0], [0, 0, 1, 0], [], []>} : vector<16x16xbf16>, vector<16x16xbf16>, vector<16x16xf32> -> vector<16x16xf32>
        %141 = arith.truncf %140 : vector<16x16xf32> to vector<16x16xbf16>
        %142 = arith.index_cast %106 : i32 to index
        %c0_72 = arith.constant 0 : index
        %143 = vector.load %arg17[%142, %c0_72] : memref<64x16xbf16, #tpu.memory_space<vmem>>, vector<16x16xbf16>
        tpu.vector_store %arg17[%142, %c0_72], %141 {strides = array<i32>} : memref<64x16xbf16, #tpu.memory_space<vmem>>, vector<16x16xbf16>,
      }
      %c4_i32_36 = arith.constant 4 : i32
      %c0_37 = arith.constant 0 : index
      %c0_38 = arith.constant 0 : index
      %63 = vector.load %arg17[%c0_37, %c0_38] : memref<64x16xbf16, #tpu.memory_space<vmem>>, vector<64x16xbf16>
      %c0_39 = arith.constant 0 : index
      %c0_40 = arith.constant 0 : index
      %64 = vector.load %arg7[%c0_39, %c0_40] : memref<64x64xbf16, #tpu.memory_space<vmem>>, vector<64x64xbf16>
      %cst_41 = arith.constant dense<0.000000e+00> : vector<16x64xf32>
      %65 = tpu.matmul %63, %64, %cst_41 {dimension_numbers = #tpu.dot_dimension_numbers<[0], [0], [1], [1], [0, 1, 1, 1], [], []>} : vector<64x16xbf16>, vector<64x64xbf16>, vector<16x64xf32> -> vector<16x64xf32>
      %c0_42 = arith.constant 0 : index
      %c0_43 = arith.constant 0 : index
      %66 = vector.load %arg8[%c0_42, %c0_43] : memref<1x64xf32, #tpu.memory_space<vmem>>, vector<1x64xf32>
      %67 = vector.shape_cast %66 : vector<1x64xf32> to vector<64xf32>
      %68 = vector.shape_cast %67 : vector<64xf32> to vector<1x64xf32>
      %69 = vector.broadcast %68 : vector<1x64xf32> to vector<16x64xf32>
      %70 = arith.addf %65, %69 : vector<16x64xf32>
      %71 = arith.addf %70, %29 : vector<16x64xf32>
      %c0_44 = arith.constant 0 : index
      %c0_45 = arith.constant 0 : index
      %72 = vector.load %arg18[%c0_44, %c0_45] : memref<16x64xf32, #tpu.memory_space<vmem>>, vector<16x64xf32>
      tpu.vector_store %arg18[%c0_44, %c0_45], %71 {strides = array<i32>} : memref<16x64xf32, #tpu.memory_space<vmem>>, vector<16x64xf32>,
      %c0_46 = arith.constant 0 : index
      %c0_47 = arith.constant 0 : index
      %73 = vector.load %arg9[%c0_46, %c0_47] : memref<1x64xf32, #tpu.memory_space<vmem>>, vector<1x64xf32>
      %74 = vector.shape_cast %73 : vector<1x64xf32> to vector<64xf32>
      %c0_48 = arith.constant 0 : index
      %c0_49 = arith.constant 0 : index
      %75 = vector.load %arg10[%c0_48, %c0_49] : memref<1x64xf32, #tpu.memory_space<vmem>>, vector<1x64xf32>
      %76 = vector.shape_cast %75 : vector<1x64xf32> to vector<64xf32>
      %cst_50 = arith.constant dense<0.000000e+00> : vector<16xf32>
      %77 = vector.multi_reduction <add>, %71, %cst_50 [1] : vector<16x64xf32> to vector<16xf32>
      %78 = vector.shape_cast %77 : vector<16xf32> to vector<16x1xf32>
      %cst_51 = arith.constant 6.400000e+01 : f32
      %79 = vector.broadcast %cst_51 : f32 to vector<16x1xf32>
      %80 = arith.divf %78, %79 : vector<16x1xf32>
      %81 = vector.broadcast %80 : vector<16x1xf32> to vector<16x64xf32>
      %82 = arith.subf %71, %81 : vector<16x64xf32>
      %83 = arith.mulf %82, %82 : vector<16x64xf32>
      %cst_52 = arith.constant dense<0.000000e+00> : vector<16xf32>
      %84 = vector.multi_reduction <add>, %83, %cst_52 [1] : vector<16x64xf32> to vector<16xf32>
      %85 = vector.shape_cast %84 : vector<16xf32> to vector<16x1xf32>
      %cst_53 = arith.constant 6.400000e+01 : f32
      %86 = vector.broadcast %cst_53 : f32 to vector<16x1xf32>
      %87 = arith.divf %85, %86 : vector<16x1xf32>
      %88 = vector.broadcast %80 : vector<16x1xf32> to vector<16x64xf32>
      %89 = arith.subf %71, %88 : vector<16x64xf32>
      %cst_54 = arith.constant 9.99999997E-7 : f32
      %90 = vector.broadcast %cst_54 : f32 to vector<16x1xf32>
      %91 = arith.addf %87, %90 : vector<16x1xf32>
      %92 = math.rsqrt %91 : vector<16x1xf32>
      %93 = vector.broadcast %92 : vector<16x1xf32> to vector<16x64xf32>
      %94 = arith.mulf %89, %93 : vector<16x64xf32>
      %95 = vector.shape_cast %74 : vector<64xf32> to vector<1x64xf32>
      %96 = vector.broadcast %95 : vector<1x64xf32> to vector<16x64xf32>
      %97 = arith.mulf %94, %96 : vector<16x64xf32>
      %98 = vector.shape_cast %76 : vector<64xf32> to vector<1x64xf32>
      %99 = vector.broadcast %98 : vector<1x64xf32> to vector<16x64xf32>
      %100 = arith.addf %97, %99 : vector<16x64xf32>
      %101 = arith.truncf %100 : vector<16x64xf32> to vector<16x64xbf16>
      %c0_55 = arith.constant 0 : index
      %c0_56 = arith.constant 0 : index
      %102 = vector.load %arg19[%c0_55, %c0_56] : memref<16x64xbf16, #tpu.memory_space<vmem>>, vector<16x64xbf16>
      tpu.vector_store %arg19[%c0_55, %c0_56], %101 {strides = array<i32>} : memref<16x64xbf16, #tpu.memory_space<vmem>>, vector<16x64xbf16>,
      %cst_57 = arith.constant 0.000000e+00 : f32
      %103 = vector.broadcast %cst_57 : f32 to vector<16x64xf32>
      %c0_58 = arith.constant 0 : index
      %c0_59 = arith.constant 0 : index
      %104 = vector.load %arg20[%c0_58, %c0_59] : memref<16x64xf32, #tpu.memory_space<vmem>>, vector<16x64xf32>
      tpu.vector_store %arg20[%c0_58, %c0_59], %103 {strides = array<i32>} : memref<16x64xf32, #tpu.memory_space<vmem>>, vector<16x64xf32>,
    } else {
    }
    %c0 = arith.constant 0 : index
    %c0_1 = arith.constant 0 : index
    %3 = vector.load %arg19[%c0, %c0_1] : memref<16x64xbf16, #tpu.memory_space<vmem>>, vector<16x64xbf16>
    %c0_2 = arith.constant 0 : index
    %c0_3 = arith.constant 0 : index
    %4 = vector.load %arg11[%c0_2, %c0_3] : memref<64x128xbf16, #tpu.memory_space<vmem>>, vector<64x128xbf16>
    %cst = arith.constant dense<0.000000e+00> : vector<16x128xf32>
    %5 = tpu.matmul %3, %4, %cst {dimension_numbers = #tpu.dot_dimension_numbers<[1], [0], [0], [1], [0, 0, 1, 1], [], []>} : vector<16x64xbf16>, vector<64x128xbf16>, vector<16x128xf32> -> vector<16x128xf32>
    %c0_4 = arith.constant 0 : index
    %c0_5 = arith.constant 0 : index
    %6 = vector.load %arg12[%c0_4, %c0_5] : memref<1x128xf32, #tpu.memory_space<vmem>>, vector<1x128xf32>
    %7 = vector.shape_cast %6 : vector<1x128xf32> to vector<128xf32>
    %8 = vector.shape_cast %7 : vector<128xf32> to vector<1x128xf32>
    %9 = vector.broadcast %8 : vector<1x128xf32> to vector<16x128xf32>
    %10 = arith.addf %5, %9 : vector<16x128xf32>
    %cst_6 = arith.constant 5.000000e-01 : f32
    %11 = vector.broadcast %cst_6 : f32 to vector<16x128xf32>
    %12 = arith.mulf %11, %10 : vector<16x128xf32>
    %cst_7 = arith.constant 0.707106769 : f32
    %13 = vector.broadcast %cst_7 : f32 to vector<16x128xf32>
    %14 = arith.mulf %10, %13 : vector<16x128xf32>
    %15 = math.erf %14 : vector<16x128xf32>
    %cst_8 = arith.constant 1.000000e+00 : f32
    %16 = vector.broadcast %cst_8 : f32 to vector<16x128xf32>
    %17 = arith.addf %16, %15 : vector<16x128xf32>
    %18 = arith.mulf %12, %17 : vector<16x128xf32>
    %c0_9 = arith.constant 0 : index
    %c0_10 = arith.constant 0 : index
    %19 = vector.load %arg20[%c0_9, %c0_10] : memref<16x64xf32, #tpu.memory_space<vmem>>, vector<16x64xf32>
    %20 = arith.truncf %18 : vector<16x128xf32> to vector<16x128xbf16>
    %c0_11 = arith.constant 0 : index
    %c0_12 = arith.constant 0 : index
    %21 = vector.load %arg13[%c0_11, %c0_12] : memref<128x64xbf16, #tpu.memory_space<vmem>>, vector<128x64xbf16>
    %cst_13 = arith.constant dense<0.000000e+00> : vector<16x64xf32>
    %22 = tpu.matmul %20, %21, %cst_13 {dimension_numbers = #tpu.dot_dimension_numbers<[1], [0], [0], [1], [0, 0, 1, 1], [], []>} : vector<16x128xbf16>, vector<128x64xbf16>, vector<16x64xf32> -> vector<16x64xf32>
    %23 = arith.addf %19, %22 : vector<16x64xf32>
    %c0_14 = arith.constant 0 : index
    %c0_15 = arith.constant 0 : index
    %24 = vector.load %arg20[%c0_14, %c0_15] : memref<16x64xf32, #tpu.memory_space<vmem>>, vector<16x64xf32>
    tpu.vector_store %arg20[%c0_14, %c0_15], %23 {strides = array<i32>} : memref<16x64xf32, #tpu.memory_space<vmem>>, vector<16x64xf32>,
    %c0_i32_16 = arith.constant 0 : i32
    %25 = arith.cmpi eq, %arg1, %c0_i32_16 : i32
    %26 = arith.extui %25 : i1 to i32
    %c0_i32_17 = arith.constant 0 : i32
    %27 = arith.cmpi ne, %26, %c0_i32_17 : i32
    scf.if %27 {
      %c0_18 = arith.constant 0 : index
      %c0_19 = arith.constant 0 : index
      %28 = vector.load %arg18[%c0_18, %c0_19] : memref<16x64xf32, #tpu.memory_space<vmem>>, vector<16x64xf32>
      %c0_20 = arith.constant 0 : index
      %c0_21 = arith.constant 0 : index
      %29 = vector.load %arg20[%c0_20, %c0_21] : memref<16x64xf32, #tpu.memory_space<vmem>>, vector<16x64xf32>
      %30 = arith.addf %28, %29 : vector<16x64xf32>
      %c0_22 = arith.constant 0 : index
      %c0_23 = arith.constant 0 : index
      %31 = vector.load %arg14[%c0_22, %c0_23] : memref<1x64xf32, #tpu.memory_space<vmem>>, vector<1x64xf32>
      %32 = vector.shape_cast %31 : vector<1x64xf32> to vector<64xf32>
      %33 = vector.shape_cast %32 : vector<64xf32> to vector<1x64xf32>
      %34 = vector.broadcast %33 : vector<1x64xf32> to vector<16x64xf32>
      %35 = arith.addf %30, %34 : vector<16x64xf32>
      %c0_24 = arith.constant 0 : index
      %c0_25 = arith.constant 0 : index
      %c0_26 = arith.constant 0 : index
      %36 = vector.load %arg15[%c0_24, %c0_25, %c0_26] : memref<1x16x64xf32, #tpu.memory_space<vmem>>, vector<1x16x64xf32>
      %37 = vector.shape_cast %36 : vector<1x16x64xf32> to vector<16x64xf32>
      %38 = vector.shape_cast %35 : vector<16x64xf32> to vector<1x16x64xf32>
      tpu.vector_store %arg15[%c0_24, %c0_25, %c0_26], %38 {strides = array<i32>} : memref<1x16x64xf32, #tpu.memory_space<vmem>>, vector<1x16x64xf32>,
    } else {
    }
    return
  }
  func.func @transform_0(%arg0: i32, %arg1: i32) -> (i32, i32, i32) {
    %c0_i32 = arith.constant 0 : i32
    %c0_i32_0 = arith.constant 0 : i32
    %c0_i32_1 = arith.constant 0 : i32
    return %arg0, %c0_i32, %c0_i32_0 : i32, i32, i32
  }
  func.func @transform_1(%arg0: i32, %arg1: i32) -> (i32, i32) {
    %c0_i32 = arith.constant 0 : i32
    %c0_i32_0 = arith.constant 0 : i32
    %c0_i32_1 = arith.constant 0 : i32
    return %c0_i32, %c0_i32_0 : i32, i32
  }
  func.func @transform_2(%arg0: i32, %arg1: i32) -> (i32, i32) {
    %c0_i32 = arith.constant 0 : i32
    %c0_i32_0 = arith.constant 0 : i32
    %c0_i32_1 = arith.constant 0 : i32
    return %c0_i32, %c0_i32_0 : i32, i32
  }
  func.func @transform_3(%arg0: i32, %arg1: i32) -> (i32, i32) {
    %c0_i32 = arith.constant 0 : i32
    %c0_i32_0 = arith.constant 0 : i32
    %c0_i32_1 = arith.constant 0 : i32
    return %c0_i32, %c0_i32_0 : i32, i32
  }
  func.func @transform_4(%arg0: i32, %arg1: i32) -> (i32, i32, i32) {
    %c0_i32 = arith.constant 0 : i32
    %c0_i32_0 = arith.constant 0 : i32
    %c0_i32_1 = arith.constant 0 : i32
    %c0_i32_2 = arith.constant 0 : i32
    return %c0_i32, %c0_i32_0, %c0_i32_1 : i32, i32, i32
  }
  func.func @transform_5(%arg0: i32, %arg1: i32) -> (i32, i32) {
    %c0_i32 = arith.constant 0 : i32
    %c0_i32_0 = arith.constant 0 : i32
    %c0_i32_1 = arith.constant 0 : i32
    return %c0_i32, %c0_i32_0 : i32, i32
  }
  func.func @transform_6(%arg0: i32, %arg1: i32) -> (i32, i32) {
    %c0_i32 = arith.constant 0 : i32
    %c0_i32_0 = arith.constant 0 : i32
    %c0_i32_1 = arith.constant 0 : i32
    return %c0_i32, %c0_i32_0 : i32, i32
  }
  func.func @transform_7(%arg0: i32, %arg1: i32) -> (i32, i32) {
    %c0_i32 = arith.constant 0 : i32
    %c0_i32_0 = arith.constant 0 : i32
    %c0_i32_1 = arith.constant 0 : i32
    return %c0_i32, %c0_i32_0 : i32, i32
  }
  func.func @transform_8(%arg0: i32, %arg1: i32) -> (i32, i32) {
    %c0_i32 = arith.constant 0 : i32
    %c0_i32_0 = arith.constant 0 : i32
    %c0_i32_1 = arith.constant 0 : i32
    return %c0_i32, %c0_i32_0 : i32, i32
  }
  func.func @transform_9(%arg0: i32, %arg1: i32) -> (i32, i32) {
    %c0_i32 = arith.constant 0 : i32
    %c0_i32_0 = arith.constant 0 : i32
    return %c0_i32, %arg1 : i32, i32
  }
  func.func @transform_10(%arg0: i32, %arg1: i32) -> (i32, i32) {
    %c0_i32 = arith.constant 0 : i32
    %c0_i32_0 = arith.constant 0 : i32
    return %c0_i32, %arg1 : i32, i32
  }
  func.func @transform_11(%arg0: i32, %arg1: i32) -> (i32, i32) {
    %c0_i32 = arith.constant 0 : i32
    %c0_i32_0 = arith.constant 0 : i32
    return %arg1, %c0_i32 : i32, i32
  }
  func.func @transform_12(%arg0: i32, %arg1: i32) -> (i32, i32) {
    %c0_i32 = arith.constant 0 : i32
    %c0_i32_0 = arith.constant 0 : i32
    %c0_i32_1 = arith.constant 0 : i32
    return %c0_i32, %c0_i32_0 : i32, i32
  }
  func.func @transform_13(%arg0: i32, %arg1: i32) -> (i32, i32, i32) {
    %c0_i32 = arith.constant 0 : i32
    %c0_i32_0 = arith.constant 0 : i32
    %c0_i32_1 = arith.constant 0 : i32
    return %arg0, %c0_i32, %c0_i32_0 : i32, i32, i32
  }
}

</mosaic_0001>

<bundles_post_ra>
// kernel: tpu_custom_call.1
= control target key start
LH: loop header
LB: loop body
LE: loop exit
PB: predicated region body
PF: predicated region fallthrough
CT: control target
= control target key end

     0   :  { %s2455_s0 = inlined_call_operand.vmem [shape: f32[2,16,64], index: 0, kind: input, shape index: {}]   ;;  %s2456_s1 = inlined_call_operand.vmem [shape: f32[1,64], index: 1, kind: input, shape index: {}]   ;;  %s2457_s2 = inlined_call_operand.vmem [shape: f32[1,64], index: 2, kind: input, shape index: {}]   ;;  %s2458_s3 = inlined_call_operand.vmem [shape: bf16[192,64], index: 3, kind: input, shape index: {}]   ;;  %s2459_s4 = inlined_call_operand.vmem [shape: f32[4,1,16], index: 4, kind: input, shape index: {}]   ;;  %s2460_s5 = inlined_call_operand.vmem [shape: bf16[64,64], index: 5, kind: input, shape index: {}]   ;;  %s2461_s6 = inlined_call_operand.vmem [shape: f32[1,64], index: 6, kind: input, shape index: {}]   ;;  %s2462_s7 = inlined_call_operand.vmem [shape: f32[1,64], index: 7, kind: input, shape index: {}]   ;;  %s2463_s8 = inlined_call_operand.vmem [shape: f32[1,64], index: 8, kind: input, shape index: {}]   ;;  %s2464_s9 = inlined_call_operand.vmem [shape: bf16[64,128], index: 9, kind: input, shape index: {}]   ;;  %s2465_s10 = inlined_call_operand.vmem [shape: f32[1,128], index: 10, kind: input, shape index: {}]   ;;  %s2466_s11 = inlined_call_operand.vmem [shape: bf16[128,64], index: 11, kind: input, shape index: {}]   ;;  %s2467_s12 = inlined_call_operand.vmem [shape: f32[1,64], index: 12, kind: input, shape index: {}]   ;;  %s2468_s13 = inlined_call_operand.hbm [shape: f32[2,16,64], index: 13, kind: output, shape index: {}]  }
   0x1   :  { %2470 = sst [smem:[#allocation10_spill]] %s2455_s0 }
   0x2   :  { %2471 = sst [smem:[#allocation11_spill]] %s2456_s1 }
   0x3   :  { %2472 = sst [smem:[#allocation12_spill]] %s2457_s2 }
   0x4   :  { %18 = vsyncpa [#allocation8], 0 }
   0x5   :  { %20 = vsyncpa [#allocation8 + $0x1], 0  ;;  %s2094_s25 = smov 0   ;;  %s2096_s26 = smov 0  }
   0x6   :  { %s2098_s27 = smov 0   ;;  %s2100_s28 = smov 0  }
   0x7   :  { %s2102_s29 = smov 0   ;;  %s2104_s30 = smov 0  }
   0x8 LB: > { %s1595_s14 = sadd.s32 4294967295, %s2010_s30   ;;  %s1596_s15 = sadd.s32 4294967294, %s2010_s30   ;;  %s2010_s30 = sphi %s2104_s30, %s26_s30   ;;  %s2006_s29 = sphi %s2102_s29, %s2483_s29   ;;  %s2002_s28 = sphi %s2100_s28, %s2482_s28   ;;  %s1998_s27 = sphi %s2098_s27, %s2481_s27   ;;  %s1994_s26 = sphi %s2096_s26, %s2480_s26   ;;  %s1990_s25 = sphi %s2094_s25, %s2479_s25  }
   0x9   : > { %s38_s16 = sadd.s32 1, %s2006_s29  ;;  %s338_s17 = sadd.s32 1, %s1998_s27 }
   0xa   : > { %p40_p0 = scmp.ge.s32.totalorder %s38_s16, 2  ;;  %p348_p1 = scmp.ne.s32.totalorder %s1998_s27, %s1994_s26 }
   0xb   : > { %p349_p2 = scmp.eq.s32.totalorder %s1595_s14, 1  ;;  %p354_p3 = scmp.ne.s32.totalorder %s1994_s26, %s1990_s25 }
   0xc   : > { %s2485_s16 = smov (%p40_p0, %s38_s16), 0  ;;  %p355_p5 = scmp.eq.s32.totalorder %s1596_s15, 1 }
   0xd   : > { %p2134_p4 = por %p349_p2, %p348_p1  ;;  %s335_s19 = ssub.s32 %s2006_s29, %s2485_s16 }
   0xe   : > { %p1602_p6 = scmp.ge.s32.totalorder %s2010_s30, 1  ;;  %p336_p7 = scmp.eq.s32.totalorder %s335_s19, 0 }
   0xf   : > { %p2141_p8 = por %p355_p5, %p354_p3  ;;  %p430_p9 = scmp.lt.s32.totalorder %s2010_s30, 3 }
  0x10   : > { %s2147_s21 = scalar_select %p336_p7, %s1998_s27, %s338_s17  }
  0x11   : > { %p431_p10 = pnand %p1602_p6, %p430_p9 }
  0x12   : > { %p486_p11 = scmp.lt.s32.totalorder (!%p431_p10), %s2002_s28, 1  ;;  %vm513_vm0 = vcmask (!%p431_p10), 523264   ;;  %s2475_s0 = sld [smem:[#allocation10_spill]] (!%p431_p10)  ;;  %v1880_v14 = vld [vmem:[%s2458_s3] sm:$0xff] (!%p431_p10)   ;;  %v1881_v15 = vld [vmem:[%s2458_s3 + $0x30] sm:$0xff] (!%p431_p10)   ;;  %v1882_v34 = vld [vmem:[%s2458_s3 + $0x8] sm:$0xff] (!%p431_p10)  }
  0x13   : > { %434 = sbr.rel (%p431_p10) target bundleno = 2592 (0xa20), region = 72  ;;  %s2469_s17 = sand.u32 (!%p431_p10), 1, %s1994_s26   ;;  %1714 = vmatprep.mubr.msk.bf16.mxu0 (!%p431_p10), %vm513_vm0, %v1880_v14  ;;  %1726 = vmatprep.mubr.msk.bf16.mxu1 (!%p431_p10), %vm513_vm0, %v1881_v15  ;;  %v1883_v35 = vld [vmem:[%s2458_s3 + $0x38] sm:$0xff] (!%p431_p10)   ;;  %v1884_v36 = vld [vmem:[%s2458_s3 + $0x10] sm:$0xff] (!%p431_p10)   ;;  %v1885_v37 = vld [vmem:[%s2458_s3 + $0x40] sm:$0xff] (!%p431_p10)   ;;  %vm810_vm1 = vcmask (!%p431_p10), 130048  }
  0x14   : > { %s2169_s19 = sshll.u32 (!%p431_p10), %s2469_s17, 4  ;;  %s2476_s1 = sld [smem:[#allocation11_spill]] (!%p431_p10)  ;;  %v1886_v38 = vld [vmem:[%s2458_s3 + $0x18] sm:$0xff] (!%p431_p10)   ;;  %v1887_v39 = vld [vmem:[%s2458_s3 + $0x48] sm:$0xff] (!%p431_p10)   ;;  %v1888_v40 = vld [vmem:[%s2458_s3 + $0x20] sm:$0xff] (!%p431_p10)  }
  0x15   : > { %s2477_s2 = sld [smem:[#allocation12_spill]] (!%p431_p10)  ;;  %v1889_v41 = vld [vmem:[%s2458_s3 + $0x50] sm:$0xff] (!%p431_p10)   ;;  %v1890_v42 = vld [vmem:[%s2458_s3 + $0x28] sm:$0xff] (!%p431_p10)   ;;  %v1891_v43 = vld [vmem:[%s2458_s3 + $0x58] sm:$0xff] (!%p431_p10)   ;;  %s2255_s24 = smov (!%p431_p10), 0  }
  0x1a   : > { %s487_s22 = scalar_select %p486_p11, %s2002_s28, 1  ;;  %v1606_v24 = vld [vmem:[%s2476_s1] ss:$0 sm:$0xff] }
  0x1b   : > { %v1607_v28 = vld [vmem:[%s2477_s2] ss:$0 sm:$0xff] }
  0x1c   : > { %s1671_s23 = sshll.u32 %s487_s22, 4 }
  0x1d   : > { %s490_s15 = scalar_lea.vmem %s2475_s0, %s1671_s23  ;;  %s2253_s23 = scalar_lea.vmem [#allocation7], %s2169_s19 }
  0x1e   : > { %v2154_v0 = vld [vmem:[%s490_s15] sm:$0xff]  ;;  %v2156_v1 = vld [vmem:[%s490_s15 + $0x8] sm:$0xff] }
  0x1f   : > { %v514_v2 = vsel %vm513_vm0, %v2154_v0, 0.0  ;;  %v517_v3 = vsel %vm513_vm0, %v2156_v1, 0.0 }
  0x20   : > { %515 = vadd.xlane.f32.xlu0 %v514_v2 }
  0x24   : > { %518 = vadd.xlane.f32.xlu0 %v517_v3 }
  0xad   : > { %v516_v4 = vpop.xlane.xlu0 %515 }
  0xae   : > { %v521_v5 = vmul.f32 0.015625, %v516_v4 }
  0xb0   : > { %v523_v6 = vsub.f32 %v2154_v0, %v521_v5 }
  0xb1   : > { %v519_v7 = vpop.xlane.xlu0 %518 }
  0xb2   : > { %v522_v8 = vmul.f32 0.015625, %v519_v7  ;;  %v525_v9 = vmul.f32 %v523_v6, %v523_v6 }
  0xb4   : > { %v524_v10 = vsub.f32 %v2156_v1, %v522_v8  ;;  %v527_v11 = vsel %vm513_vm0, %v525_v9, 0.0 }
  0xb5   : > { %528 = vadd.xlane.f32.xlu1 %v527_v11 }
  0xb6   : > { %v526_v12 = vmul.f32 %v524_v10, %v524_v10 }
  0xb8   : > { %v530_v13 = vsel %vm513_vm0, %v526_v12, 0.0 }
  0xb9   : > { %531 = vadd.xlane.f32.xlu1 %v530_v13 }
 0x142   : > { %v529_v16 = vpop.xlane.xlu1 %528 }
 0x143   : > { %v533_v17 = vmul.f32 0.015625, %v529_v16 }
 0x145   : > { %v535_v18 = vadd.f32 1e-06, %v533_v17 }
 0x146   : > { %v532_v19 = vpop.xlane.xlu1 %531 }
 0x147   : > { %1892 = vrsqrt.f32 %v535_v18  ;;  %v534_v20 = vmul.f32 0.015625, %v532_v19 }
 0x149   : > { %v536_v21 = vadd.f32 1e-06, %v534_v20 }
 0x14b   : > { %1894 = vrsqrt.f32 %v536_v21 }
 0x151   : > { %v1893_v22 = vpop.eup %1892 }
 0x152   : > { %v539_v23 = vmul.f32 %v1893_v22, %v523_v6 }
 0x154   : > { %v547_v27 = vmul.f32 %v1606_v24, %v539_v23 }
 0x155   : > { %v1895_v25 = vpop.eup %1894 }
 0x156   : > { %v540_v26 = vmul.f32 %v1895_v25, %v524_v10  ;;  %v555_v30 = vadd.f32 %v1607_v28, %v547_v27 }
 0x158   : > { %v548_v29 = vmul.f32 %v1606_v24, %v540_v26 }
 0x15a   : > { %v556_v31 = vadd.f32 %v1607_v28, %v548_v29 }
 0x15c   : > { %v581_v32 = vpack.c.bf16 %v556_v31, %v555_v30 }
 0x15e   : > { %1806 = vmatprep.subr.msk.bf16.mxu0 %vm513_vm0, %v581_v32  ;;  %1807 = vmatprep.subr.msk.bf16.mxu1 %vm513_vm0, %v581_v32  ;;  %v679_v33 = vsel %vm513_vm0, %v581_v32, 0 }
 0x15f   : > { %1713 = vmatpush3.bf16.xpose.msra.mxu0 %v679_v33  ;;  %1805 = vmatpush3.bf16.xpose.msra.mxu1 %v679_v33 }
 0x166   : > { %1715 = vmatmul.mubr.msk.bf16.vlgmr.msra.gmra.mrb[0].mxu0 %vm513_vm0, %v1882_v34  ;;  %1727 = vmatmul.mubr.msk.bf16.vlgmr.msra.gmra.mrb[0].mxu1 %vm513_vm0, %v1883_v35 }
 0x167   : > { %1718 = vmatprep.mubr.msk.bf16.mxu0 %vm513_vm0, %v1884_v36  ;;  %1730 = vmatprep.mubr.msk.bf16.mxu1 %vm513_vm0, %v1885_v37 }
 0x16e   : > { %1719 = vmatmul.mubr.msk.bf16.gmra.mrb[4].mxu0 %vm513_vm0, %v1886_v38  ;;  %1731 = vmatmul.mubr.msk.bf16.gmra.mrb[4].mxu1 %vm513_vm0, %v1887_v39 }
 0x16f   : > { %1722 = vmatprep.mubr.msk.bf16.mxu0 %vm513_vm0, %v1888_v40  ;;  %1734 = vmatprep.mubr.msk.bf16.mxu1 %vm513_vm0, %v1889_v41 }
 0x176   : > { %1723 = vmatmul.mubr.msk.bf16.gmra.mrb[8].mxu0 %vm513_vm0, %v1890_v42  ;;  %1735 = vmatmul.mubr.msk.bf16.gmra.mrb[8].mxu1 %vm513_vm0, %v1891_v43 }
 0x239   : > { %v1716_v44 = vpop.f32.mrb[0].mxu0  ;;  %v1728_v45 = vpop.f32.mrb[0].mxu1 }
 0x23a   : > { %813 = vst.msk [vmem:[#allocation2 + $0x10] sm:$0xff] %vm810_vm1, %v1716_v44  ;;  %825 = vst.msk [vmem:[#allocation2 + $0x70] sm:$0xff] %vm810_vm1, %v1728_v45  ;;  %v715_v46 = vpop.f32.mrb[1].mxu0  ;;  %v763_v47 = vpop.f32.mrb[1].mxu1 }
 0x23b   : > { %811 = vst.msk [vmem:[#allocation2] sm:$0xff] %vm810_vm1, %v715_v46  ;;  %823 = vst.msk [vmem:[#allocation2 + $0x60] sm:$0xff] %vm810_vm1, %v763_v47  ;;  %v1717_v48 = vpop.f32.mrb[2].mxu0  ;;  %v1729_v49 = vpop.f32.mrb[2].mxu1 }
 0x23c   : > { %814 = vst.msk [vmem:[#allocation2 + $0x18] sm:$0xff] %vm810_vm1, %v1717_v48  ;;  %826 = vst.msk [vmem:[#allocation2 + $0x78] sm:$0xff] %vm810_vm1, %v1729_v49  ;;  %v718_v50 = vpop.f32.mrb[3].mxu0  ;;  %v766_v51 = vpop.f32.mrb[3].mxu1 }
 0x23d   : > { %812 = vst.msk [vmem:[#allocation2 + $0x8] sm:$0xff] %vm810_vm1, %v718_v50  ;;  %824 = vst.msk [vmem:[#allocation2 + $0x68] sm:$0xff] %vm810_vm1, %v766_v51 }
 0x241   : > { %v1720_v52 = vpop.f32.mrb[4].mxu0  ;;  %v1732_v53 = vpop.f32.mrb[4].mxu1 }
 0x242   : > { %817 = vst.msk [vmem:[#allocation2 + $0x30] sm:$0xff] %vm810_vm1, %v1720_v52  ;;  %829 = vst.msk [vmem:[#allocation2 + $0x90] sm:$0xff] %vm810_vm1, %v1732_v53  ;;  %v731_v54 = vpop.f32.mrb[5].mxu0  ;;  %v779_v55 = vpop.f32.mrb[5].mxu1 }
 0x243   : > { %815 = vst.msk [vmem:[#allocation2 + $0x20] sm:$0xff] %vm810_vm1, %v731_v54  ;;  %827 = vst.msk [vmem:[#allocation2 + $0x80] sm:$0xff] %vm810_vm1, %v779_v55  ;;  %v1721_v56 = vpop.f32.mrb[6].mxu0  ;;  %v1733_v57 = vpop.f32.mrb[6].mxu1 }
 0x244   : > { %818 = vst.msk [vmem:[#allocation2 + $0x38] sm:$0xff] %vm810_vm1, %v1721_v56  ;;  %830 = vst.msk [vmem:[#allocation2 + $0x98] sm:$0xff] %vm810_vm1, %v1733_v57  ;;  %v734_v58 = vpop.f32.mrb[7].mxu0  ;;  %v782_v59 = vpop.f32.mrb[7].mxu1 }
 0x245   : > { %816 = vst.msk [vmem:[#allocation2 + $0x28] sm:$0xff] %vm810_vm1, %v734_v58  ;;  %828 = vst.msk [vmem:[#allocation2 + $0x88] sm:$0xff] %vm810_vm1, %v782_v59 }
 0x249   : > { %v1724_v60 = vpop.f32.mrb[8].mxu0  ;;  %v1736_v61 = vpop.f32.mrb[8].mxu1 }
 0x24a   : > { %821 = vst.msk [vmem:[#allocation2 + $0x50] sm:$0xff] %vm810_vm1, %v1724_v60  ;;  %833 = vst.msk [vmem:[#allocation2 + $0xb0] sm:$0xff] %vm810_vm1, %v1736_v61  ;;  %v747_v62 = vpop.f32.mrb[9].mxu0  ;;  %v795_v63 = vpop.f32.mrb[9].mxu1 }
 0x24b   : > { %819 = vst.msk [vmem:[#allocation2 + $0x40] sm:$0xff] %vm810_vm1, %v747_v62  ;;  %831 = vst.msk [vmem:[#allocation2 + $0xa0] sm:$0xff] %vm810_vm1, %v795_v63  ;;  %v1725_v2 = vpop.f32.mrb[10].mxu0  ;;  %v1737_v3 = vpop.f32.mrb[10].mxu1 }
 0x24c   : > { %822 = vst.msk [vmem:[#allocation2 + $0x58] sm:$0xff] %vm810_vm1, %v1725_v2  ;;  %834 = vst.msk [vmem:[#allocation2 + $0xb8] sm:$0xff] %vm810_vm1, %v1737_v3  ;;  %v750_v4 = vpop.f32.mrb[11].mxu0  ;;  %v798_v5 = vpop.f32.mrb[11].mxu1 }
 0x24d   : > { %820 = vst.msk [vmem:[#allocation2 + $0x48] sm:$0xff] %vm810_vm1, %v750_v4  ;;  %832 = vst.msk [vmem:[#allocation2 + $0xa8] sm:$0xff] %vm810_vm1, %v798_v5 }
 0x24e LB: >> { %v2016_v6 = vmov 0.0|0.0   ;;  %vm2017_vm2 = vmmov 0   ;;  %v2018_v7 = vmov 0.0   ;;  %s1632_s0 = sshll.u32 %s2014_s24, 4  ;;  %s855_s15 = scalar_lea.vmem %s2459_s4, %s2014_s24  ;;  %v930_v18 = vlaneseq  ;;  %s2014_s24 = sphi %s2255_s24, %s840_s24  }
 0x24f   : >> { %1801 = vmatprep.subr.bf16.mxu1 %v2016_v6  ;;  %1742 = vmatprep.mubr.msk.f32.mxu1 %vm2017_vm2, %v2018_v7  ;;  %s2265_s19 = scalar_lea.vmem [#allocation2], %s1632_s0  ;;  %v856_v14 = vld [vmem:[%s855_s15] sm:$0x1]  ;;  %s1066_s17 = sshra.s32 %s1632_s0, 4 }
 0x250   : >> { %1751 = vmatprep.subr.bf16.mxu0 %v2018_v7  ;;  %1753 = vmatprep.mubr.msk.bf16.mxu0 %vm2017_vm2, %v2018_v7  ;;  %v931_v19 = vshrl.u32 %v930_v18, 7  ;;  %s1642_s22 = sshll.u32 %s1066_s17, 3  ;;  %s840_s24 = sadd.s32 1, %s2014_s24  }
 0x251   : >> { %s1069_s1 = scalar_lea.vmem [#allocation3], %s1642_s22  ;;  %p837_p12 = scmp.ge.s32.totalorder %s840_s24, 4  }
 0x252   : >> { %v932_v20 = vsub.s32 0, %v931_v19  ;;  %v2019_v58 = vmov (%p837_p12), 0.0   ;;  %v1904_v59 = vld [vmem:[%s2460_s5] sm:$0xff] (%p837_p12)   ;;  %vm2020_vm3 = vmmov (%p837_p12), 0   ;;  %v1905_v60 = vld [vmem:[%s2460_s5 + $0x8] sm:$0xff] (%p837_p12)   ;;  %v1906_v62 = vld [vmem:[%s2460_s5 + $0x10] sm:$0xff] (%p837_p12)  }
 0x253   : > { %1224 = vst.msk [vmem:[#allocation6] sm:$0xff] (%p837_p12), %vm513_vm0, %v2019_v58  ;;  %1225 = vst.msk [vmem:[#allocation6 + $0x8] sm:$0xff] (%p837_p12), %vm513_vm0, %v2019_v58  ;;  %v1907_v2 = vld [vmem:[%s2460_s5 + $0x18] sm:$0xff] (%p837_p12)   ;;  %v1643_v4 = vld [vmem:[%s2461_s6] ss:$0 sm:$0xff] (%p837_p12)  ;;  %s1672_s24 = sshll.u32 (%p837_p12), %s2002_s28, 8 }
 0x254   : >> { %v845_v8 = vld [vmem:[%s2265_s19] sm:$0xff]  ;;  %v846_v9 = vld [vmem:[%s2265_s19 + $0x8] sm:$0xff]  ;;  %s1467_s14 = sshll.u32 (%p837_p12), %s2253_s23, 4  ;;  %s2399_s22 = scalar_lea.hbm (%p837_p12), %s2468_s13, %s1672_s24  ;;  %s2401_s14 = int_to_ptr.vmem [resolvable:$true] %s1467_s14 }
 0x255   : >> { %v1634_v10 = vld [vmem:[%s2265_s19 + $0x40] sm:$0xff]  ;;  %v853_v11 = vpack.c.bf16 %v846_v9, %v845_v8  ;;  %v1635_v12 = vld [vmem:[%s2265_s19 + $0x48] sm:$0xff]  ;;  %s2478_s28 = sand.u32 (%p837_p12), 1, %s1994_s26   ;;  %s1928_s0 = scalar_lea.vmem (%p837_p12), %s2401_s14, 256 }
 0x256   : >> { %v854_v13 = vpack.c.bf16 %v1635_v12, %v1634_v10  ;;  %v1637_v48 = vld [vmem:[%s2265_s19 + $0x80] sm:$0xff]  ;;  %v1638_v49 = vld [vmem:[%s2265_s19 + $0x88] sm:$0xff]  ;;  %p1929_p13 = scmp.ne.s32.totalorder (%p837_p12), %s2401_s14, %s1928_s0  ;;  %s2021_s19 = smov (%p837_p12), [#allocation7]  }
 0x257   : >> { %934 = vxpose.xlu0.c.b16.start.end [1/1] (short) (narrow) %v853_v11, 16  ;;  %v1016_v50 = vpack.c.bf16 %v1638_v49, %v1637_v48  ;;  %v1915_v48 = vld [vmem:[%s2466_s11 + $0x18] sm:$0xff] (%p837_p12)   ;;  %v1916_v49 = vld [vmem:[%s2466_s11 + $0x20] sm:$0xff] (%p837_p12)   ;;  %s1932_s24 = sshll.u32 (%p837_p12), %s2021_s19, 4  ;;  %s1933_s24 = int_to_ptr.vmem [resolvable:$false] %s1932_s24 }
 0x258   : >> { %1803 = vmatpush3.bf16.msra.mxu1 %v854_v13  ;;  %p1930_p0 = pnand (%p837_p12), %p1929_p13, %p2134_p4  ;;  %s1934_s15 = scalar_lea.vmem (%p837_p12), %s1933_s24, 512 }
 0x259   : >> { %1745 = vmatprep.subr.bf16.mxu1 %v2018_v7  ;;  %p1935_p2 = scmp.lt.s32.totalorder (%p837_p12), %s2401_s14, %s1933_s24  ;;  %p1936_p3 = scmp.lt.s32.totalorder (%p837_p12), %s1934_s15, %s1928_s0 }
 0x25a   : > { %p1931_p1 = pneg (%p837_p12), %p1930_p0 }
 0x25b   : >> { %1743 = vmatmul.mubr.msk.f32.vlgmr.msra.gmra.mrb[0].mxu1 %vm810_vm1, %v856_v14  ;;  %p1937_p5 = por (%p837_p12), %p1936_p3, %p1935_p2 }
 0x25c   : >> { %1746 = vmatpush3.bf16.msra.mxu1 %v854_v13  ;;  %1747 = vmatprep.mubr.msk.bf16.mxu1 %vm2017_vm2, %v2018_v7 }
 0x25d   : > { %1757 = vmatprep.subr.bf16.mxu1 (%p837_p12), %v2019_v58  ;;  %p1938_p6 = pnand (%p837_p12), %p1937_p5, %p1931_p1 }
 0x2bd   : >> { %v942_v15 = vpop.trf.xlu0 }
 0x2be   : >> { %1748 = vmatmul.mubr.msk.bf16.vlgmr.msra.gmra.mrb[4].mxu1 %vm810_vm1, %v942_v15 }
 0x2bf   : > { %1765 = vmatprep.mubr.msk.bf16.mxu1 (%p837_p12), %vm2020_vm3, %v2019_v58  ;;  %1758 = vmatpush3.bf16.msra.mxu1 (%p837_p12), %v1904_v59 }
 0x2c0   : > { %1759 = vmatprep.subr.bf16.mxu1 (%p837_p12), %v2019_v58 }
 0x2c3   : > { %1760 = vmatpush3.bf16.msra.mxu1 (%p837_p12), %v1905_v60 }
 0x2c4   : > { %1761 = vmatprep.subr.bf16.mxu1 (%p837_p12), %v2019_v58 }
 0x2c7   : > { %1762 = vmatpush3.bf16.msra.mxu1 (%p837_p12), %v1906_v62 }
 0x2c8   : > { %1763 = vmatprep.subr.bf16.mxu1 (%p837_p12), %v2019_v58 }
 0x2cb   : > { %1764 = vmatpush3.bf16.msra.mxu1 (%p837_p12), %v1907_v2 }
 0x2cc   : > { %1769 = vmatprep.subr.bf16.mxu1 (%p837_p12), %v2019_v58 }
 0x32e   : >> { %v926_v16 = vpop.f32.mrb[0].mxu1 }
 0x32f   : >> { %v1744_v17 = vpop.f32.mrb[1].mxu1  ;;  %v933_v21 = vrot.slane %v926_v16, %v932_v20 }
 0x391   : >> { %v987_v22 = vpop.f32.mrb[4].mxu1 }
 0x392   : >> { %v988_v23 = vadd.f32 %v987_v22, %v933_v21  ;;  %v1749_v24 = vpop.f32.mrb[5].mxu1 }
 0x393   : >> { %v990_v25 = vpop.f32.mrb[6].mxu1  ;;  %v1909_v24 = vld [vmem:[%s2464_s9 + $0x8] sm:$0xff] (%p837_p12)  }
 0x394   : >> { %v991_v26 = vadd.f32 %v990_v25, %v933_v21  ;;  %v1750_v27 = vpop.f32.mrb[7].mxu1  ;;  %v994_v28 = vsel %vm810_vm1, %v988_v23, -inf  ;;  %v1910_v25 = vld [vmem:[%s2464_s9 + $0x10] sm:$0xff] (%p837_p12)  }
 0x395   : >> { %995 = vmax.xlane.f32.xlu0 %v994_v28  ;;  %v1912_v27 = vld [vmem:[%s2466_s11] sm:$0xff] (%p837_p12)   ;;  %v1913_v28 = vld [vmem:[%s2466_s11 + $0x8] sm:$0xff] (%p837_p12)  }
 0x396   : >> { %v997_v29 = vsel %vm810_vm1, %v991_v26, -inf }
 0x397   : >> { %998 = vmax.xlane.f32.xlu1 %v997_v29 }
 0x422   : >> { %v996_v30 = vpop.xlane.xlu0 %995 }
 0x423   : >> { %v1000_v31 = vsub.f32 %v988_v23, %v996_v30  ;;  %v1908_v23 = vld [vmem:[%s2464_s9] sm:$0xff] (%p837_p12)  }
 0x424   : >> { %v999_v32 = vpop.xlane.xlu1 %998 }
 0x425   : >> { %v1002_v33 = vmul.f32 1.442695, %v1000_v31  ;;  %v1001_v34 = vsub.f32 %v991_v26, %v999_v32  ;;  %v1911_v26 = vld [vmem:[%s2464_s9 + $0x18] sm:$0xff] (%p837_p12)  }
 0x427   : >> { %1896 = vpow2.f32 %v1002_v33  ;;  %v1004_v35 = vmul.f32 1.442695, %v1001_v34 }
 0x429   : >> { %1898 = vpow2.f32 %v1004_v35 }
 0x431   : >> { %v1897_v36 = vpop.eup %1896 }
 0x432   : >> { %v1006_v37 = vsel %vm810_vm1, %v1897_v36, 0.0 }
 0x433   : >> { %v1899_v38 = vpop.eup %1898  ;;  %1007 = vadd.xlane.f32.xlu1 %v1006_v37  ;;  %v1649_v37 = vld [vmem:[%s2462_s7] ss:$0 sm:$0xff] (%p837_p12) }
 0x434   : >> { %v1009_v39 = vsel %vm810_vm1, %v1899_v38, 0.0 }
 0x437   : >> { %1010 = vadd.xlane.f32.xlu1 %v1009_v39 }
 0x4c0   : >> { %v1008_v40 = vpop.xlane.xlu1 %1007 }
 0x4c1   : >> { %1900 = vrcp.f32 %v1008_v40 }
 0x4c4   : >> { %v1011_v41 = vpop.xlane.xlu1 %1010 }
 0x4c5   : >> { %1902 = vrcp.f32 %v1011_v41  ;;  %v1650_v41 = vld [vmem:[%s2463_s8] ss:$0 sm:$0xff] (%p837_p12) }
 0x4cb   : >> { %v1901_v42 = vpop.eup %1900 }
 0x4cc   : >> { %v1014_v44 = vmul.f32 %v1901_v42, %v1897_v36 }
 0x4cf   : >> { %v1903_v43 = vpop.eup %1902 }
 0x4d0   : >> { %v1015_v45 = vmul.f32 %v1903_v43, %v1899_v38 }
 0x4d2   : >> { %v1017_v46 = vpack.c.bf16 %v1015_v45, %v1014_v44 }
 0x4d4   : >> { %v1022_v47 = vsel %vm810_vm1, %v1017_v46, 0 }
 0x4d5   : >> { %1752 = vmatpush3.bf16.xpose.msra.mxu0 %v1022_v47  ;;  %v1914_v47 = vld [vmem:[%s2466_s11 + $0x10] sm:$0xff] (%p837_p12)  }
 0x4d6   : > { %1781 = vmatprep.subr.bf16.mxu0 (%p837_p12), %v2019_v58 }
 0x4dc   : >> { %1754 = vmatmul.mubr.msk.bf16.vlgmr.msra.gmra.mrb[0].mxu0 %vm810_vm1, %v1016_v50  ;;  %v1917_v50 = vld [vmem:[%s2466_s11 + $0x28] sm:$0xff] (%p837_p12)  }
 0x4dd   : > { %1797 = vmatprep.mubr.msk.bf16.mxu0 (%p837_p12), %vm2020_vm3, %v2019_v58  ;;  %1782 = vmatpush3.bf16.msra.mxu0 (%p837_p12), %v1912_v27 }
 0x4de   : > { %1783 = vmatprep.subr.bf16.mxu0 (%p837_p12), %v2019_v58 }
 0x4e1   : > { %1784 = vmatpush3.bf16.msra.mxu0 (%p837_p12), %v1913_v28 }
 0x4e2   : > { %1785 = vmatprep.subr.bf16.mxu0 (%p837_p12), %v2019_v58 }
 0x4e5   : > { %1786 = vmatpush3.bf16.msra.mxu0 (%p837_p12), %v1914_v47 }
 0x4e6   : > { %1787 = vmatprep.subr.bf16.mxu0 (%p837_p12), %v2019_v58 }
 0x4e9   : > { %1788 = vmatpush3.bf16.msra.mxu0 (%p837_p12), %v1915_v48 }
 0x4ea   : > { %1789 = vmatprep.subr.bf16.mxu0 (%p837_p12), %v2019_v58 }
 0x4ed   : > { %1790 = vmatpush3.bf16.msra.mxu0 (%p837_p12), %v1916_v49 }
 0x4ee   : > { %1791 = vmatprep.subr.bf16.mxu0 (%p837_p12), %v2019_v58 }
 0x4f1   : > { %1792 = vmatpush3.bf16.msra.mxu0 (%p837_p12), %v1917_v50 }
 0x4f2   : > { %1793 = vmatprep.subr.bf16.mxu0 (%p837_p12), %v2019_v58 }
 0x5ae   : > { %839 = sbr.rel (!%p837_p12) target bundleno = 590 (0x24e), region = 136 }
 0x5af   : >> { %v1058_v51 = vpop.f32.mrb[0].mxu0 }
 0x5b0   : >> { %v1755_v52 = vpop.f32.mrb[1].mxu0 }
 0x5b1   : >> { %v1061_v53 = vpop.f32.mrb[2].mxu0  ;;  %v1919_v52 = vld [vmem:[%s2466_s11 + $0x38] sm:$0xff] (%p837_p12)  }
 0x5b2   : >> { %v1065_v54 = vpack.c.bf16 %v1061_v53, %v1058_v51  ;;  %v1756_v55 = vpop.f32.mrb[3].mxu0  ;;  %v1918_v51 = vld [vmem:[%s2466_s11 + $0x30] sm:$0xff] (%p837_p12)   ;;  %v1651_v53 = vld [vmem:[%s2465_s10] ss:$0 sm:$0xff] (%p837_p12) }
 0x5b3   : > { %1794 = vmatpush3.bf16.msra.mxu0 (%p837_p12), %v1918_v51 }
 0x5b4   : >> { %1070 = vst.msk [vmem:[%s1069_s1] sm:$0xff] %vm810_vm1, %v1065_v54  ;;  %1795 = vmatprep.subr.bf16.mxu0 (%p837_p12), %v2019_v58  ;;  %s2409_s1 = scalar_lea.sflag (%p837_p12), [#allocation8], %s2478_s28 }
 0x5b7   : > { %1796 = vmatpush3.bf16.msra.mxu0 %v1919_v52 }
 0x5bb   : > { %v1071_v56 = vld [vmem:[#allocation3] sm:$0xff]  ;;  %v1072_v57 = vld [vmem:[#allocation3 + $0x8] sm:$0xff]  ;;  %v1073_v61 = vld [vmem:[#allocation3 + $0x10] sm:$0xff] }
 0x5bc   : > { %1090 = vxpose.xlu0.c.b16.start [1/4] (short) (narrow) %v1071_v56, 16  ;;  %v1074_v63 = vld [vmem:[#allocation3 + $0x18] sm:$0xff] }
 0x5c0   : > { %1091 = vxpose.xlu0.c.b16.cont [2/4] (short) (narrow) %v1072_v57, 16 }
 0x5c4   : > { %1092 = vxpose.xlu0.c.b16.cont [3/4] (short) (narrow) %v1073_v61, 16 }
 0x5c8   : > { %1093 = vxpose.xlu0.c.b16.end [4/4] (short) (narrow) %v1074_v63, 16 }
 0x622   : > { %v1098_v3 = vpop.trf.xlu0 }
 0x623   : > { %1766 = vmatmul.mubr.msk.bf16.vlgmr.msra.gmra.mrb[0].mxu1 %vm513_vm0, %v1098_v3 }
 0x624   : > { %1777 = vmatprep.mubr.msk.bf16.mxu1 %vm2020_vm3, %v2019_v58  ;;  %1770 = vmatpush3.bf16.msra.mxu1 %v1908_v23 }
 0x625   : > { %1771 = vmatprep.subr.bf16.mxu1 %v2019_v58 }
 0x628   : > { %1772 = vmatpush3.bf16.msra.mxu1 %v1909_v24 }
 0x629   : > { %1773 = vmatprep.subr.bf16.mxu1 %v2019_v58 }
 0x62c   : > { %1774 = vmatpush3.bf16.msra.mxu1 %v1910_v25 }
 0x62d   : > { %1775 = vmatprep.subr.bf16.mxu1 %v2019_v58 }
 0x630   : > { %1776 = vmatpush3.bf16.msra.mxu1 %v1911_v26 }
 0x6f6   : > { %v1167_v5 = vpop.f32.mrb[0].mxu1 }
 0x6f7   : > { %v1168_v6 = vadd.f32 %v1643_v4, %v1167_v5  ;;  %v1767_v7 = vpop.f32.mrb[1].mxu1 }
 0x6f8   : > { %v1170_v8 = vpop.f32.mrb[2].mxu1 }
 0x6f9   : > { %v1174_v9 = vadd.f32 %v1168_v6, %v2154_v0  ;;  %v1171_v10 = vadd.f32 %v1643_v4, %v1170_v8  ;;  %v1768_v11 = vpop.f32.mrb[3].mxu1 }
 0x6fa   : > { %v1322_v11 = vld [vmem:[#allocation6 + $0x8] sm:$0xff] }
 0x6fb   : > { %1176 = vst.msk [vmem:[#allocation4] sm:$0xff] %vm513_vm0, %v1174_v9  ;;  %v1175_v12 = vadd.f32 %v1171_v10, %v2156_v1  ;;  %v1180_v13 = vsel %vm513_vm0, %v1174_v9, 0.0 }
 0x6fc   : > { %1181 = vadd.xlane.f32.xlu1 %v1180_v13 }
 0x6fd   : > { %1177 = vst.msk [vmem:[#allocation4 + $0x8] sm:$0xff] %vm513_vm0, %v1175_v12  ;;  %v1183_v14 = vsel %vm513_vm0, %v1175_v12, 0.0 }
 0x700   : > { %1184 = vadd.xlane.f32.xlu1 %v1183_v14 }
 0x789   : > { %v1182_v15 = vpop.xlane.xlu1 %1181 }
 0x78a   : > { %v1186_v16 = vmul.f32 0.015625, %v1182_v15 }
 0x78c   : > { %v1188_v17 = vsub.f32 %v1174_v9, %v1186_v16  ;;  %v1321_v9 = vld [vmem:[#allocation6] sm:$0xff] }
 0x78d   : > { %v1185_v18 = vpop.xlane.xlu1 %1184 }
 0x78e   : > { %v1187_v19 = vmul.f32 0.015625, %v1185_v18  ;;  %v1190_v0 = vmul.f32 %v1188_v17, %v1188_v17 }
 0x790   : > { %v1189_v20 = vsub.f32 %v1175_v12, %v1187_v19  ;;  %v1192_v21 = vsel %vm513_vm0, %v1190_v0, 0.0  ;;  %v1665_v19 = vld [vmem:[%s2467_s12] ss:$0 sm:$0xff] }
 0x791   : > { %1193 = vadd.xlane.f32.xlu1 %v1192_v21 }
 0x792   : > { %v1191_v22 = vmul.f32 %v1189_v20, %v1189_v20 }
 0x794   : > { %v1195_v1 = vsel %vm513_vm0, %v1191_v22, 0.0 }
 0x795   : > { %1196 = vadd.xlane.f32.xlu1 %v1195_v1 }
 0x81e   : > { %v1194_v29 = vpop.xlane.xlu1 %1193 }
 0x81f   : > { %v1198_v30 = vmul.f32 0.015625, %v1194_v29 }
 0x821   : > { %v1200_v31 = vadd.f32 1e-06, %v1198_v30 }
 0x822   : > { %v1197_v32 = vpop.xlane.xlu1 %1196 }
 0x823   : > { %1920 = vrsqrt.f32 %v1200_v31  ;;  %v1199_v33 = vmul.f32 0.015625, %v1197_v32 }
 0x825   : > { %v1201_v34 = vadd.f32 1e-06, %v1199_v33 }
 0x827   : > { %1922 = vrsqrt.f32 %v1201_v34 }
 0x82d   : > { %v1921_v35 = vpop.eup %1920 }
 0x82e   : > { %v1204_v36 = vmul.f32 %v1921_v35, %v1188_v17  ;;  %v1436_v17 = vld [vmem:[#allocation4] sm:$0xff] }
 0x830   : > { %v1212_v39 = vmul.f32 %v1649_v37, %v1204_v36 }
 0x831   : > { %v1923_v38 = vpop.eup %1922 }
 0x832   : > { %v1205_v40 = vmul.f32 %v1923_v38, %v1189_v20  ;;  %v1220_v43 = vadd.f32 %v1650_v41, %v1212_v39  ;;  %v1437_v20 = vld [vmem:[#allocation4 + $0x8] sm:$0xff] }
 0x834   : > { %v1213_v42 = vmul.f32 %v1649_v37, %v1205_v40 }
 0x836   : > { %v1221_v44 = vadd.f32 %v1650_v41, %v1213_v42 }
 0x838   : > { %v1222_v45 = vpack.c.bf16 %v1221_v44, %v1220_v43 }
 0x83a   : > { %1223 = vst.msk [vmem:[#allocation5] sm:$0xff] %vm513_vm0, %v1222_v45 }
 0x841   : > { %v1226_v46 = vld [vmem:[#allocation5] sm:$0xff] }
 0x842   : > { %1778 = vmatmul.mubr.msk.bf16.vlgmr.msra.gmra.mrb[4].mxu1 %vm513_vm0, %v1226_v46 }
 0x915   : > { %v1304_v54 = vpop.f32.mrb[4].mxu1 }
 0x916   : > { %v1305_v55 = vadd.f32 %v1651_v53, %v1304_v54  ;;  %v1779_v56 = vpop.f32.mrb[5].mxu1 }
 0x917   : > { %v1307_v57 = vpop.f32.mrb[6].mxu1 }
 0x918   : > { %v1313_v59 = vmul.f32 0.70710677, %v1305_v55  ;;  %v1308_v60 = vadd.f32 %v1651_v53, %v1307_v57  ;;  %v1780_v61 = vpop.f32.mrb[7].mxu1  ;;  %v1311_v3 = vmul.f32 0.5, %v1305_v55 }
 0x91a   : > { %1924 = verf.f32 %v1313_v59  ;;  %v1314_v62 = vmul.f32 0.70710677, %v1308_v60  ;;  %v1312_v4 = vmul.f32 0.5, %v1308_v60 }
 0x91c   : > { %1926 = verf.f32 %v1314_v62 }
 0x924   : > { %v1925_v58 = vpop.eup %1924 }
 0x925   : > { %v1317_v63 = vadd.f32 1.0, %v1925_v58 }
 0x926   : > { %v1927_v2 = vpop.eup %1926 }
 0x927   : > { %v1318_v5 = vadd.f32 1.0, %v1927_v2  ;;  %v1319_v6 = vmul.f32 %v1317_v63, %v1311_v3 }
 0x929   : > { %v1320_v7 = vmul.f32 %v1318_v5, %v1312_v4 }
 0x92b   : > { %v1323_v8 = vpack.c.bf16 %v1320_v7, %v1319_v6 }
 0x92d   : > { %1798 = vmatmul.mubr.bf16.vlgmr.msra.gmra.mrb[0].mxu0 %v1323_v8 }
 0xa00   : > { %v1422_v10 = vpop.f32.mrb[0].mxu0 }
 0xa01   : > { %v1429_v12 = vadd.f32 %v1422_v10, %v1321_v9  ;;  %v1799_v13 = vpop.f32.mrb[1].mxu0 }
 0xa02   : > { %v1425_v14 = vpop.f32.mrb[2].mxu0 }
 0xa03   : > { %1431 = vst.msk [vmem:[#allocation6] sm:$0xff] %vm513_vm0, %v1429_v12  ;;  %v1430_v15 = vadd.f32 %v1425_v14, %v1322_v11  ;;  %v1800_v16 = vpop.f32.mrb[3].mxu0 }
 0xa05   : > { %1432 = vst.msk [vmem:[#allocation6 + $0x8] sm:$0xff] %vm513_vm0, %v1430_v15 }
 0xa0a   : > { %v1438_v18 = vld [vmem:[#allocation6] sm:$0xff] }
 0xa0b   : > { %v1440_v0 = vadd.f32 %v1438_v18, %v1436_v17 }
 0xa0c   : > { %v1439_v21 = vld [vmem:[#allocation6 + $0x8] sm:$0xff] }
 0xa0d   : > { %v1441_v22 = vadd.f32 %v1439_v21, %v1437_v20  ;;  %v1449_v1 = vadd.f32 %v1665_v19, %v1440_v0 }
 0xa0f   : > { %v1450_v23 = vadd.f32 %v1665_v19, %v1441_v22  ;;  %1451 = vst.msk [vmem:[%s2253_s23] sm:$0xff] %vm513_vm0, %v1449_v1 }
 0xa11   : > { %1452 = vst.msk [vmem:[%s2253_s23 + $0x8] sm:$0xff] %vm513_vm0, %v1450_v23 }
 0xa12   : > { %1941 = shalt.err (!%p1938_p6)
}
 0xa13   : > { %s1942_s23 = scalar_lea.hbm %s2399_s22, 256  ;;  %s1946_s19 = scalar_lea.hbm %s2468_s13, 512 }
 0xa14   : > { %p1943_p7 = scmp.ne.s32.totalorder %s2399_s22, %s1942_s23  ;;  %p1947_p11 = scmp.lt.u32.totalorder %s2399_s22, %s2468_s13 }
 0xa15   : > { %p1948_p12 = scmp.lt.u32.totalorder %s1946_s19, %s1942_s23  ;;  %p1950_p0 = scmp.lt.u32.totalorder %s1942_s23, %s2399_s22 }
 0xa16   : > { %p1944_p9 = pnand %p1943_p7, %p2134_p4 }
 0xa17   : > { %p1949_p13 = por %p1948_p12, %p1947_p11 }
 0xa18   : > { %p1945_p10 = pneg %p1944_p9 }
 0xa19   : > { %p1951_p1 = por %p1950_p0, %p1949_p13 }
 0xa1b   : > { %p1952_p2 = pnand %p1951_p1, %p1945_p10 }
 0xa1d   : > { %1955 = shalt.err (!%p1952_p2)
}
 0xa1e   : > { %s2022_s0 = smov 128   ;;  %s2023_s15 = smov 8  }
 0xa1f   : > { %1808 = dma.vmem_to_hbm [thread:$0]  (%p2134_p4), %s2401_s14, 256, %s2399_s22, %s2409_s1, %s2022_s0, %s2022_s0, %s2023_s15  }
 0xa20 PF: > { %p1814_p3 = scmp.ge.s32.totalorder %s2010_s30, 2  ;;  %s1482_s2 = sand.u32 1, %s1990_s25  }
 0xa21   : > { %s1483_s23 = scalar_lea.sflag [#allocation8], %s1482_s2 }
 0xa22   : > { %p1811_p5 = pnand %p1814_p3, %p2141_p8 }
 0xa24   : > { %1985 = dma.done.wait (!%p1811_p5), %s1483_s23, 256  }
 0xa25   : > { %1987 = vsyncadd (!%p1811_p5), %s1483_s23, 4294967040  ;;  %s26_s30 = sadd.s32 1, %s2010_s30   ;;  %s2479_s25 = smov %s1994_s26 }
 0xa26   : > { %p23_p6 = scmp.ge.s32.totalorder %s26_s30, 4   ;;  %s2480_s26 = smov %s1998_s27 }
 0xa27   : > { %s2481_s27 = smov %s2147_s21  ;;  %s2482_s28 = smov %s2006_s29 }
 0xa28   : > { %s2483_s29 = smov %s2485_s16  ;;  %25 = sbr.rel (!%p23_p6) target bundleno = 8 (0x8), region = 147 }
 0xa2f   :  { %1488 = vsyncpa [#allocation8], 1 }
 0xa30   :  { %1490 = vsyncpa [#allocation8 + $0x1], 1 }

</bundles_post_ra>
